<compile_context>
chip_gen: v7x
topology: tpu7x:2x2x1
jax: 0.10.0
libtpu: 0.0.40
codegen_flags: <defaults>
</compile_context>

<pallas_src>
import math

import jax
import jax.numpy as jnp
from jax import lax
from jax.experimental import pallas as pl
from jax.experimental.pallas import tpu as pltpu

_LN_EPS = 1e-5  # torch.nn.LayerNorm default


def _round_up(x, m):
    return ((x + m - 1) // m) * m


def _pad2d(a, rows, cols):
    return jnp.pad(a, ((0, rows - a.shape[0]), (0, cols - a.shape[1])))


def _pad1d(v, n):
    return jnp.pad(v, (0, n - v.shape[0]))


def _make_mlp_kernel(h_true, h_pad):
    """Fused (Linear -> ReLU -> LayerNorm) x (layer_N + 1) kernel body."""
    needs_mask = h_pad != h_true
    inv_n = 1.0 / float(h_true)

    def block(a, w, b, g, beta):
        # Matmul in the weight dtype (bf16 fast path), f32 accumulation on the MXU.
        h = jnp.dot(a.astype(w.dtype), w, preferred_element_type=jnp.float32)
        h = jnp.maximum(h + b, 0.0)                      # bias + ReLU
        # LayerNorm over the TRUE hidden size (padded columns of h are exactly 0).
        mean = jnp.sum(h, axis=-1, keepdims=True) * inv_n
        d = h - mean
        if needs_mask:
            mask = lax.broadcasted_iota(jnp.int32, d.shape, 1) < h_true
            d = jnp.where(mask, d, 0.0)
        var = jnp.sum(d * d, axis=-1, keepdims=True) * inv_n
        return d * lax.rsqrt(var + _LN_EPS) * g + beta   # f32

    def kernel(x_ref, w1_ref, b1_ref, g1_ref, be1_ref,
               wh_ref, bh_ref, gh_ref, beh_ref, o_ref, act_ref):
        l = pl.program_id(1)

        @pl.when(l == 0)            # fc1 stage
        def _():
            act_ref[...] = block(x_ref[...], w1_ref[...], b1_ref[...],
                                 g1_ref[...], be1_ref[...])

        @pl.when(l > 0)             # fc2[l - 1] stage (refs are 2-D via Squeezed)
        def _():
            act_ref[...] = block(act_ref[...], wh_ref[...], bh_ref[...],
                                 gh_ref[...], beh_ref[...])

        @pl.when(l == pl.num_programs(1) - 1)
        def _():
            o_ref[...] = act_ref[...].astype(o_ref.dtype)

    return kernel


def mlp_layer_forward(params, x, *, bm=None, compute_dtype=jnp.bfloat16):
    """LayerNorm(ReLU(Linear)) applied (layer_N + 1) times, fully fused."""
    B, d_in = x.shape
    H = params["fc1"]["w"].shape[1]
    L = len(params["fc2"])
    out_dtype = x.dtype
    f32 = jnp.float32

    # Lane-dense padded sizes (multiples of 128 on the feature axes).
    Dp = _round_up(d_in, 128)
    Hp = _round_up(H, 128)
    if bm is None:
        bm = 256                                  # large MXU-friendly batch tile
    bm = max(8, min(_round_up(bm, 8), _round_up(B, 8)))
    Bp = _round_up(B, bm)

    # ---- pad / pack parameters (zero padding keeps the math exact) ----------
    xp = _pad2d(x.astype(f32), Bp, Dp).astype(compute_dtype)
    p1 = params["fc1"]
    w1 = _pad2d(p1["w"].astype(f32), Dp, Hp).astype(compute_dtype)
    b1 = _pad1d(p1["b"].astype(f32), Hp).reshape(1, Hp)
    g1 = _pad1d(p1["gamma"].astype(f32), Hp).reshape(1, Hp)
    be1 = _pad1d(p1["beta"].astype(f32), Hp).reshape(1, Hp)

    if L > 0:
        wh = jnp.stack([_pad2d(p["w"].astype(f32), Hp, Hp)
                        for p in params["fc2"]]).astype(compute_dtype)
        bh = jnp.stack([_pad1d(p["b"].astype(f32), Hp)
                        for p in params["fc2"]])[:, None, :]
        gh = jnp.stack([_pad1d(p["gamma"].astype(f32), Hp)
                        for p in params["fc2"]])[:, None, :]
        beh = jnp.stack([_pad1d(p["beta"].astype(f32), Hp)
                         for p in params["fc2"]])[:, None, :]
    else:  # dummy (unused) hidden-layer stack so shapes stay static
        wh = jnp.zeros((1, Hp, Hp), compute_dtype)
        bh = jnp.zeros((1, 1, Hp), f32)
        gh = jnp.ones((1, 1, Hp), f32)
        beh = jnp.zeros((1, 1, Hp), f32)

    n_stage = L + 1
    grid = (Bp // bm, n_stage)

    hidden_map = lambda i, l: (jnp.maximum(l - 1, 0), 0, 0)
    in_specs = [
        pl.BlockSpec((bm, Dp), lambda i, l: (i, 0)),                 # x tile
        pl.BlockSpec((Dp, Hp), lambda i, l: (0, 0)),                 # fc1 W (resident)
        pl.BlockSpec((1, Hp), lambda i, l: (0, 0)),                  # fc1 bias
        pl.BlockSpec((1, Hp), lambda i, l: (0, 0)),                  # fc1 LN gamma
        pl.BlockSpec((1, Hp), lambda i, l: (0, 0)),                  # fc1 LN beta
        pl.BlockSpec((pl.Squeezed(), Hp, Hp), hidden_map),           # fc2 W[l-1]
        pl.BlockSpec((pl.Squeezed(), 1, Hp), hidden_map),            # fc2 bias[l-1]
        pl.BlockSpec((pl.Squeezed(), 1, Hp), hidden_map),            # fc2 gamma[l-1]
        pl.BlockSpec((pl.Squeezed(), 1, Hp), hidden_map),            # fc2 beta[l-1]
    ]
    out_specs = pl.BlockSpec((bm, Hp), lambda i, l: (i, 0))
    scratch_shapes = [pltpu.VMEM((bm, Hp), jnp.float32)]             # resident activation

    # ---- VMEM budget / compiler params --------------------------------------
    itm = jnp.dtype(compute_dtype).itemsize
    est_vmem = (2 * bm * Dp * itm            # double-buffered x tiles
                + 2 * Dp * Hp * itm          # fc1 weight
                + 2 * Hp * Hp * itm          # fc2 weight block (double-buffered)
                + 2 * 6 * Hp * 4             # biases / gammas / betas
                + 2 * bm * Hp * 4            # output tile
                + bm * Hp * 4                # activation scratch
                + 4 * bm * Hp * 4)           # headroom for kernel temporaries
    cp_kwargs = dict(dimension_semantics=("parallel", "arbitrary"))
    if est_vmem > 24 * 1024 * 1024:
        cp_kwargs["vmem_limit_bytes"] = min(int(est_vmem * 1.25), 64 * 1024 * 1024)

    cost = pl.CostEstimate(
        flops=int(2 * Bp * Dp * Hp + 2 * L * Bp * Hp * Hp + 10 * n_stage * Bp * Hp),
        transcendentals=int(n_stage * Bp),
        bytes_accessed=int(Bp * Dp * itm + Dp * Hp * itm + max(L, 1) * Hp * Hp * itm
                           + 6 * (1 + max(L, 1)) * Hp * 4
                           + Bp * Hp * jnp.dtype(out_dtype).itemsize),
    )

    out = pl.pallas_call(
        _make_mlp_kernel(H, Hp),
        out_shape=jax.ShapeDtypeStruct((Bp, Hp), out_dtype),
        grid_spec=pltpu.PrefetchScalarGridSpec(
            num_scalar_prefetch=0,
            grid=grid,
            in_specs=in_specs,
            out_specs=out_specs,
            scratch_shapes=scratch_shapes,
        ),
        compiler_params=pltpu.CompilerParams(**cp_kwargs),
        cost_estimate=cost,
    )(xp, w1, b1, g1, be1, wh, bh, gh, beh)

    return out[:B, :H]


# ---------------- parameter init (deterministic, mirrors the PyTorch module) --

def _orthogonal(key, out_dim, in_dim, gain):
    """Orthogonal init of a (out_dim, in_dim) matrix (like nn.init.orthogonal_)."""
    a = jax.random.normal(key, (max(out_dim, in_dim), min(out_dim, in_dim)),
                          dtype=jnp.float32)
    q, r = jnp.linalg.qr(a)
    q = q * jnp.sign(jnp.diag(r))          # make the decomposition unique
    q = q[:out_dim, :in_dim] if out_dim >= in_dim else q.T[:out_dim, :in_dim]
    return gain * q


def init_mlp_params(key, input_dim, hidden_size, layer_N):
    gain = math.sqrt(2.0)  # nn.init.calculate_gain('relu')
    k1, k2 = jax.random.split(key)

    def make_block(k, in_dim):
        w_torch = _orthogonal(k, hidden_size, in_dim, gain)   # (out, in)
        return {
            "w": jnp.asarray(w_torch.T),                      # (in, out) for x @ W
            "b": jnp.zeros((hidden_size,), jnp.float32),
            "gamma": jnp.ones((hidden_size,), jnp.float32),
            "beta": jnp.zeros((hidden_size,), jnp.float32),
        }

    fc1 = make_block(k1, input_dim)
    fc_h = make_block(k2, hidden_size)
    fc2 = [fc_h for _ in range(layer_N)]   # get_clones = deepcopy -> identical layers
    return {"fc1": fc1, "fc2": fc2}


# ---------------- pure-JAX reference ------------------------------------------

def mlp_layer_ref(params, x, compute_dtype=jnp.float32):
    def block(a, p):
        al = a.astype(compute_dtype)
        wl = p["w"].astype(compute_dtype)
        h = jnp.dot(al, wl, preferred_element_type=jnp.float32) + p["b"]
        h = jnp.maximum(h, 0.0)
        mean = jnp.mean(h, axis=-1, keepdims=True)
        var = jnp.mean(jnp.square(h - mean), axis=-1, keepdims=True)
        return (h - mean) * lax.rsqrt(var + _LN_EPS) * p["gamma"] + p["beta"]

    x = block(x, params["fc1"])
    for p in params["fc2"]:
        x = block(x, p)
    return x


if __name__ == "__main__":
    key = jax.random.PRNGKey(0)
    kx, kp, ks = jax.random.split(key, 3)

    batch, input_dim, hidden_size, layer_N = 16, 20, 32, 2
    x = jax.random.normal(kx, (batch, input_dim), dtype=jnp.float32)
    params = init_mlp_params(kp, input_dim, hidden_size, layer_N)

    # 1) Exact-numerics path (f32 operands) vs. pure-JAX reference.
    out_f32 = jax.block_until_ready(
        mlp_layer_forward(params, x, compute_dtype=jnp.float32))
    ref_f32 = mlp_layer_ref(params, x, compute_dtype=jnp.float32)
    assert out_f32.shape == (batch, hidden_size)
    assert jnp.allclose(out_f32, ref_f32, atol=1e-5, rtol=1e-5), "f32 mismatch"

    # 2) Fast bf16-MXU path (default) vs. a bf16-mirrored reference.
    out_bf16 = jax.block_until_ready(mlp_layer_forward(params, x))
    ref_bf16 = mlp_layer_ref(params, x, compute_dtype=jnp.bfloat16)
    assert out_bf16.shape == (batch, hidden_size)
    assert jnp.allclose(out_bf16, ref_bf16, atol=3e-2, rtol=3e-2), "bf16 mismatch"

    # 3) Distinct random parameters per layer (exercises the per-layer indexing
    #    and the padded-LayerNorm masking), f32 path.
    def rand_block(k, in_dim):
        kw, kb, kg, kbt = jax.random.split(k, 4)
        return {
            "w": 0.3 * jax.random.normal(kw, (in_dim, hidden_size), jnp.float32),
            "b": 0.1 * jax.random.normal(kb, (hidden_size,), jnp.float32),
            "gamma": 1.0 + 0.1 * jax.random.normal(kg, (hidden_size,), jnp.float32),
            "beta": 0.1 * jax.random.normal(kbt, (hidden_size,), jnp.float32),
        }

    keys = jax.random.split(ks, layer_N + 1)
    params_rand = {
        "fc1": rand_block(keys[0], input_dim),
        "fc2": [rand_block(keys[i + 1], hidden_size) for i in range(layer_N)],
    }
    out_r = jax.block_until_ready(
        mlp_layer_forward(params_rand, x, compute_dtype=jnp.float32))
    ref_r = mlp_layer_ref(params_rand, x, compute_dtype=jnp.float32)
    assert jnp.allclose(out_r, ref_r, atol=1e-4, rtol=1e-4), "random-params mismatch"

    print("KERNEL_OK")
</pallas_src>

<mosaic_0001>
module attributes {stable_mosaic.version = 11 : i64} {
  func.func @kernel(%arg0: i32, %arg1: i32, %arg2: memref<16x128xf32, #tpu.memory_space<vmem>>, %arg3: memref<128x128xf32, #tpu.memory_space<vmem>>, %arg4: memref<1x128xf32, #tpu.memory_space<vmem>>, %arg5: memref<1x128xf32, #tpu.memory_space<vmem>>, %arg6: memref<1x128xf32, #tpu.memory_space<vmem>>, %arg7: memref<1x128x128xf32, #tpu.memory_space<vmem>>, %arg8: memref<1x1x128xf32, #tpu.memory_space<vmem>>, %arg9: memref<1x1x128xf32, #tpu.memory_space<vmem>>, %arg10: memref<1x1x128xf32, #tpu.memory_space<vmem>>, %arg11: memref<16x128xf32, #tpu.memory_space<vmem>>, %arg12: memref<16x128xf32, #tpu.memory_space<vmem>>) attributes {dimension_semantics = [#tpu.dimension_semantics<parallel>, #tpu.dimension_semantics<arbitrary>], iteration_bounds = array<i64: 1, 3>, scalar_prefetch = 0 : i64, scratch_operands = 1 : i64, tpu.core_type = #tpu.core_type<tc>, window_params = [{transform_indices = @transform_0, window_bounds = array<i64: 16, 128>}, {pipeline_mode = #tpu.pipeline_mode<synchronous>, transform_indices = @transform_1, window_bounds = array<i64: 128, 128>}, {pipeline_mode = #tpu.pipeline_mode<synchronous>, transform_indices = @transform_2, window_bounds = array<i64: 1, 128>}, {pipeline_mode = #tpu.pipeline_mode<synchronous>, transform_indices = @transform_3, window_bounds = array<i64: 1, 128>}, {pipeline_mode = #tpu.pipeline_mode<synchronous>, transform_indices = @transform_4, window_bounds = array<i64: 1, 128>}, {transform_indices = @transform_5, window_bounds = array<i64: 1, 128, 128>}, {transform_indices = @transform_6, window_bounds = array<i64: 1, 1, 128>}, {transform_indices = @transform_7, window_bounds = array<i64: 1, 1, 128>}, {transform_indices = @transform_8, window_bounds = array<i64: 1, 1, 128>}, {transform_indices = @transform_9, window_bounds = array<i64: 16, 128>}]} {
    %c0_i32 = arith.constant 0 : i32
    %0 = arith.cmpi eq, %arg1, %c0_i32 : i32
    %1 = arith.extui %0 : i1 to i32
    %c0_i32_0 = arith.constant 0 : i32
    %2 = arith.cmpi ne, %1, %c0_i32_0 : i32
    scf.if %2 {
      %c0 = arith.constant 0 : index
      %c0_4 = arith.constant 0 : index
      %9 = vector.load %arg2[%c0, %c0_4] : memref<16x128xf32, #tpu.memory_space<vmem>>, vector<16x128xf32>
      %c0_5 = arith.constant 0 : index
      %c0_6 = arith.constant 0 : index
      %10 = vector.load %arg3[%c0_5, %c0_6] : memref<128x128xf32, #tpu.memory_space<vmem>>, vector<128x128xf32>
      %c0_7 = arith.constant 0 : index
      %c0_8 = arith.constant 0 : index
      %11 = vector.load %arg4[%c0_7, %c0_8] : memref<1x128xf32, #tpu.memory_space<vmem>>, vector<1x128xf32>
      %c0_9 = arith.constant 0 : index
      %c0_10 = arith.constant 0 : index
      %12 = vector.load %arg5[%c0_9, %c0_10] : memref<1x128xf32, #tpu.memory_space<vmem>>, vector<1x128xf32>
      %c0_11 = arith.constant 0 : index
      %c0_12 = arith.constant 0 : index
      %13 = vector.load %arg6[%c0_11, %c0_12] : memref<1x128xf32, #tpu.memory_space<vmem>>, vector<1x128xf32>
      %cst = arith.constant dense<0.000000e+00> : vector<16x128xf32>
      %14 = tpu.matmul %9, %10, %cst {dimension_numbers = #tpu.dot_dimension_numbers<[1], [0], [0], [1], [0, 0, 1, 1], [], []>} : vector<16x128xf32>, vector<128x128xf32>, vector<16x128xf32> -> vector<16x128xf32>
      %15 = vector.broadcast %11 : vector<1x128xf32> to vector<16x128xf32>
      %16 = arith.addf %14, %15 : vector<16x128xf32>
      %cst_13 = arith.constant 0.000000e+00 : f32
      %17 = vector.broadcast %cst_13 : f32 to vector<16x128xf32>
      %18 = arith.maximumf %16, %17 : vector<16x128xf32>
      %cst_14 = arith.constant dense<0.000000e+00> : vector<16xf32>
      %19 = vector.multi_reduction <add>, %18, %cst_14 [1] : vector<16x128xf32> to vector<16xf32>
      %20 = vector.shape_cast %19 : vector<16xf32> to vector<16x1xf32>
      %cst_15 = arith.constant 3.125000e-02 : f32
      %21 = vector.broadcast %cst_15 : f32 to vector<16x1xf32>
      %22 = arith.mulf %20, %21 : vector<16x1xf32>
      %23 = vector.broadcast %22 : vector<16x1xf32> to vector<16x128xf32>
      %24 = arith.subf %18, %23 : vector<16x128xf32>
      %25 = tpu.iota {dimensions = array<i32: 1>} : vector<16x128xi32>
      %c32_i32 = arith.constant 32 : i32
      %26 = vector.broadcast %c32_i32 : i32 to vector<16x128xi32>
      %27 = arith.cmpi slt, %25, %26 : vector<16x128xi32>
      %cst_16 = arith.constant 0.000000e+00 : f32
      %28 = vector.broadcast %cst_16 : f32 to vector<16x128xf32>
      %29 = arith.select %27, %24, %28 : vector<16x128xi1>, vector<16x128xf32>
      %30 = arith.mulf %29, %29 : vector<16x128xf32>
      %cst_17 = arith.constant dense<0.000000e+00> : vector<16xf32>
      %31 = vector.multi_reduction <add>, %30, %cst_17 [1] : vector<16x128xf32> to vector<16xf32>
      %32 = vector.shape_cast %31 : vector<16xf32> to vector<16x1xf32>
      %cst_18 = arith.constant 3.125000e-02 : f32
      %33 = vector.broadcast %cst_18 : f32 to vector<16x1xf32>
      %34 = arith.mulf %32, %33 : vector<16x1xf32>
      %cst_19 = arith.constant 9.99999974E-6 : f32
      %35 = vector.broadcast %cst_19 : f32 to vector<16x1xf32>
      %36 = arith.addf %34, %35 : vector<16x1xf32>
      %37 = math.rsqrt %36 : vector<16x1xf32>
      %38 = vector.broadcast %37 : vector<16x1xf32> to vector<16x128xf32>
      %39 = arith.mulf %29, %38 : vector<16x128xf32>
      %40 = vector.broadcast %12 : vector<1x128xf32> to vector<16x128xf32>
      %41 = arith.mulf %39, %40 : vector<16x128xf32>
      %42 = vector.broadcast %13 : vector<1x128xf32> to vector<16x128xf32>
      %43 = arith.addf %41, %42 : vector<16x128xf32>
      %c0_20 = arith.constant 0 : index
      %c0_21 = arith.constant 0 : index
      %44 = vector.load %arg12[%c0_20, %c0_21] : memref<16x128xf32, #tpu.memory_space<vmem>>, vector<16x128xf32>
      tpu.vector_store %arg12[%c0_20, %c0_21], %43 {strides = array<i32>} : memref<16x128xf32, #tpu.memory_space<vmem>>, vector<16x128xf32>,
    } else {
    }
    %c0_i32_1 = arith.constant 0 : i32
    %3 = arith.cmpi sgt, %arg1, %c0_i32_1 : i32
    %4 = arith.extui %3 : i1 to i32
    %c0_i32_2 = arith.constant 0 : i32
    %5 = arith.cmpi ne, %4, %c0_i32_2 : i32
    scf.if %5 {
      %c0 = arith.constant 0 : index
      %c0_4 = arith.constant 0 : index
      %9 = vector.load %arg12[%c0, %c0_4] : memref<16x128xf32, #tpu.memory_space<vmem>>, vector<16x128xf32>
      %c0_5 = arith.constant 0 : index
      %c0_6 = arith.constant 0 : index
      %c0_7 = arith.constant 0 : index
      %10 = vector.load %arg7[%c0_5, %c0_6, %c0_7] : memref<1x128x128xf32, #tpu.memory_space<vmem>>, vector<1x128x128xf32>
      %11 = vector.shape_cast %10 : vector<1x128x128xf32> to vector<128x128xf32>
      %c0_8 = arith.constant 0 : index
      %c0_9 = arith.constant 0 : index
      %c0_10 = arith.constant 0 : index
      %12 = vector.load %arg8[%c0_8, %c0_9, %c0_10] : memref<1x1x128xf32, #tpu.memory_space<vmem>>, vector<1x1x128xf32>
      %13 = vector.shape_cast %12 : vector<1x1x128xf32> to vector<1x128xf32>
      %c0_11 = arith.constant 0 : index
      %c0_12 = arith.constant 0 : index
      %c0_13 = arith.constant 0 : index
      %14 = vector.load %arg9[%c0_11, %c0_12, %c0_13] : memref<1x1x128xf32, #tpu.memory_space<vmem>>, vector<1x1x128xf32>
      %15 = vector.shape_cast %14 : vector<1x1x128xf32> to vector<1x128xf32>
      %c0_14 = arith.constant 0 : index
      %c0_15 = arith.constant 0 : index
      %c0_16 = arith.constant 0 : index
      %16 = vector.load %arg10[%c0_14, %c0_15, %c0_16] : memref<1x1x128xf32, #tpu.memory_space<vmem>>, vector<1x1x128xf32>
      %17 = vector.shape_cast %16 : vector<1x1x128xf32> to vector<1x128xf32>
      %cst = arith.constant dense<0.000000e+00> : vector<16x128xf32>
      %18 = tpu.matmul %9, %11, %cst {dimension_numbers = #tpu.dot_dimension_numbers<[1], [0], [0], [1], [0, 0, 1, 1], [], []>} : vector<16x128xf32>, vector<128x128xf32>, vector<16x128xf32> -> vector<16x128xf32>
      %19 = vector.broadcast %13 : vector<1x128xf32> to vector<16x128xf32>
      %20 = arith.addf %18, %19 : vector<16x128xf32>
      %cst_17 = arith.constant 0.000000e+00 : f32
      %21 = vector.broadcast %cst_17 : f32 to vector<16x128xf32>
      %22 = arith.maximumf %20, %21 : vector<16x128xf32>
      %cst_18 = arith.constant dense<0.000000e+00> : vector<16xf32>
      %23 = vector.multi_reduction <add>, %22, %cst_18 [1] : vector<16x128xf32> to vector<16xf32>
      %24 = vector.shape_cast %23 : vector<16xf32> to vector<16x1xf32>
      %cst_19 = arith.constant 3.125000e-02 : f32
      %25 = vector.broadcast %cst_19 : f32 to vector<16x1xf32>
      %26 = arith.mulf %24, %25 : vector<16x1xf32>
      %27 = vector.broadcast %26 : vector<16x1xf32> to vector<16x128xf32>
      %28 = arith.subf %22, %27 : vector<16x128xf32>
      %29 = tpu.iota {dimensions = array<i32: 1>} : vector<16x128xi32>
      %c32_i32 = arith.constant 32 : i32
      %30 = vector.broadcast %c32_i32 : i32 to vector<16x128xi32>
      %31 = arith.cmpi slt, %29, %30 : vector<16x128xi32>
      %cst_20 = arith.constant 0.000000e+00 : f32
      %32 = vector.broadcast %cst_20 : f32 to vector<16x128xf32>
      %33 = arith.select %31, %28, %32 : vector<16x128xi1>, vector<16x128xf32>
      %34 = arith.mulf %33, %33 : vector<16x128xf32>
      %cst_21 = arith.constant dense<0.000000e+00> : vector<16xf32>
      %35 = vector.multi_reduction <add>, %34, %cst_21 [1] : vector<16x128xf32> to vector<16xf32>
      %36 = vector.shape_cast %35 : vector<16xf32> to vector<16x1xf32>
      %cst_22 = arith.constant 3.125000e-02 : f32
      %37 = vector.broadcast %cst_22 : f32 to vector<16x1xf32>
      %38 = arith.mulf %36, %37 : vector<16x1xf32>
      %cst_23 = arith.constant 9.99999974E-6 : f32
      %39 = vector.broadcast %cst_23 : f32 to vector<16x1xf32>
      %40 = arith.addf %38, %39 : vector<16x1xf32>
      %41 = math.rsqrt %40 : vector<16x1xf32>
      %42 = vector.broadcast %41 : vector<16x1xf32> to vector<16x128xf32>
      %43 = arith.mulf %33, %42 : vector<16x128xf32>
      %44 = vector.broadcast %15 : vector<1x128xf32> to vector<16x128xf32>
      %45 = arith.mulf %43, %44 : vector<16x128xf32>
      %46 = vector.broadcast %17 : vector<1x128xf32> to vector<16x128xf32>
      %47 = arith.addf %45, %46 : vector<16x128xf32>
      %c0_24 = arith.constant 0 : index
      %c0_25 = arith.constant 0 : index
      %48 = vector.load %arg12[%c0_24, %c0_25] : memref<16x128xf32, #tpu.memory_space<vmem>>, vector<16x128xf32>
      tpu.vector_store %arg12[%c0_24, %c0_25], %47 {strides = array<i32>} : memref<16x128xf32, #tpu.memory_space<vmem>>, vector<16x128xf32>,
    } else {
    }
    %c2_i32 = arith.constant 2 : i32
    %6 = arith.cmpi eq, %arg1, %c2_i32 : i32
    %7 = arith.extui %6 : i1 to i32
    %c0_i32_3 = arith.constant 0 : i32
    %8 = arith.cmpi ne, %7, %c0_i32_3 : i32
    scf.if %8 {
      %c0 = arith.constant 0 : index
      %c0_4 = arith.constant 0 : index
      %9 = vector.load %arg12[%c0, %c0_4] : memref<16x128xf32, #tpu.memory_space<vmem>>, vector<16x128xf32>
      %c0_5 = arith.constant 0 : index
      %c0_6 = arith.constant 0 : index
      %10 = vector.load %arg11[%c0_5, %c0_6] : memref<16x128xf32, #tpu.memory_space<vmem>>, vector<16x128xf32>
      tpu.vector_store %arg11[%c0_5, %c0_6], %9 {strides = array<i32>} : memref<16x128xf32, #tpu.memory_space<vmem>>, vector<16x128xf32>,
    } else {
    }
    return
  }
  func.func @transform_0(%arg0: i32, %arg1: i32) -> (i32, i32) {
    %c0_i32 = arith.constant 0 : i32
    %c0_i32_0 = arith.constant 0 : i32
    return %arg0, %c0_i32 : i32, i32
  }
  func.func @transform_1(%arg0: i32, %arg1: i32) -> (i32, i32) {
    %c0_i32 = arith.constant 0 : i32
    %c0_i32_0 = arith.constant 0 : i32
    %c0_i32_1 = arith.constant 0 : i32
    return %c0_i32, %c0_i32_0 : i32, i32
  }
  func.func @transform_2(%arg0: i32, %arg1: i32) -> (i32, i32) {
    %c0_i32 = arith.constant 0 : i32
    %c0_i32_0 = arith.constant 0 : i32
    %c0_i32_1 = arith.constant 0 : i32
    return %c0_i32, %c0_i32_0 : i32, i32
  }
  func.func @transform_3(%arg0: i32, %arg1: i32) -> (i32, i32) {
    %c0_i32 = arith.constant 0 : i32
    %c0_i32_0 = arith.constant 0 : i32
    %c0_i32_1 = arith.constant 0 : i32
    return %c0_i32, %c0_i32_0 : i32, i32
  }
  func.func @transform_4(%arg0: i32, %arg1: i32) -> (i32, i32) {
    %c0_i32 = arith.constant 0 : i32
    %c0_i32_0 = arith.constant 0 : i32
    %c0_i32_1 = arith.constant 0 : i32
    return %c0_i32, %c0_i32_0 : i32, i32
  }
  func.func @transform_5(%arg0: i32, %arg1: i32) -> (i32, i32, i32) {
    %c1_i32 = arith.constant 1 : i32
    %0 = arith.subi %arg1, %c1_i32 : i32
    %c0_i32 = arith.constant 0 : i32
    %1 = arith.maxsi %0, %c0_i32 : i32
    %c0_i32_0 = arith.constant 0 : i32
    %c0_i32_1 = arith.constant 0 : i32
    %c0_i32_2 = arith.constant 0 : i32
    return %1, %c0_i32_0, %c0_i32_1 : i32, i32, i32
  }
  func.func @transform_6(%arg0: i32, %arg1: i32) -> (i32, i32, i32) {
    %c1_i32 = arith.constant 1 : i32
    %0 = arith.subi %arg1, %c1_i32 : i32
    %c0_i32 = arith.constant 0 : i32
    %1 = arith.maxsi %0, %c0_i32 : i32
    %c0_i32_0 = arith.constant 0 : i32
    %c0_i32_1 = arith.constant 0 : i32
    %c0_i32_2 = arith.constant 0 : i32
    return %1, %c0_i32_0, %c0_i32_1 : i32, i32, i32
  }
  func.func @transform_7(%arg0: i32, %arg1: i32) -> (i32, i32, i32) {
    %c1_i32 = arith.constant 1 : i32
    %0 = arith.subi %arg1, %c1_i32 : i32
    %c0_i32 = arith.constant 0 : i32
    %1 = arith.maxsi %0, %c0_i32 : i32
    %c0_i32_0 = arith.constant 0 : i32
    %c0_i32_1 = arith.constant 0 : i32
    %c0_i32_2 = arith.constant 0 : i32
    return %1, %c0_i32_0, %c0_i32_1 : i32, i32, i32
  }
  func.func @transform_8(%arg0: i32, %arg1: i32) -> (i32, i32, i32) {
    %c1_i32 = arith.constant 1 : i32
    %0 = arith.subi %arg1, %c1_i32 : i32
    %c0_i32 = arith.constant 0 : i32
    %1 = arith.maxsi %0, %c0_i32 : i32
    %c0_i32_0 = arith.constant 0 : i32
    %c0_i32_1 = arith.constant 0 : i32
    %c0_i32_2 = arith.constant 0 : i32
    return %1, %c0_i32_0, %c0_i32_1 : i32, i32, i32
  }
  func.func @transform_9(%arg0: i32, %arg1: i32) -> (i32, i32) {
    %c0_i32 = arith.constant 0 : i32
    %c0_i32_0 = arith.constant 0 : i32
    return %arg0, %c0_i32 : i32, i32
  }
}

</mosaic_0001>

<bundles_post_ra>
// kernel: tpu_custom_call.1
= control target key start
LH: loop header
LB: loop body
LE: loop exit
PB: predicated region body
PF: predicated region fallthrough
CT: control target
= control target key end

     0   :  { %s1786_s0 = inlined_call_operand.hbm [shape: f32[16,128], index: 0, kind: input, shape index: {}]   ;;  %s1787_s1 = inlined_call_operand.hbm [shape: f32[128,128], index: 1, kind: input, shape index: {}]   ;;  %s1788_s2 = inlined_call_operand.vmem [shape: f32[1,128], index: 2, kind: input, shape index: {}]   ;;  %s1789_s3 = inlined_call_operand.vmem [shape: f32[1,128], index: 3, kind: input, shape index: {}]   ;;  %s1790_s4 = inlined_call_operand.vmem [shape: f32[1,128], index: 4, kind: input, shape index: {}]   ;;  %s1791_s5 = inlined_call_operand.hbm [shape: f32[2,128,128], index: 5, kind: input, shape index: {}]   ;;  %s1792_s6 = inlined_call_operand.vmem [shape: f32[2,1,128], index: 6, kind: input, shape index: {}]   ;;  %s1793_s7 = inlined_call_operand.vmem [shape: f32[2,1,128], index: 7, kind: input, shape index: {}]   ;;  %s1794_s8 = inlined_call_operand.vmem [shape: f32[2,1,128], index: 8, kind: input, shape index: {}]   ;;  %s1795_s9 = inlined_call_operand.hbm [shape: f32[16,128], index: 9, kind: output, shape index: {}]  }
   0x1   :  { %1803 = sst [smem:[#allocation14_spill]] %s1789_s3 }
   0x2   :  { %1804 = sst [smem:[#allocation15_spill]] %s1790_s4 }
   0x3   :  { %1805 = sst [smem:[#allocation16_spill]] %s1795_s9 }
   0x4   :  { %14 = vsyncpa [#allocation4], 0 }
   0x5   :  { %15 = vsyncpa [#allocation7], 0 }
   0x6   :  { %16 = vsyncpa [#allocation5], 0  ;;  %s1503_s30 = smov 0   ;;  %s1505_s10 = smov 0  }
   0x7   :  { %s1507_s11 = smov 0   ;;  %s1509_s12 = smov 0  }
   0x8   :  { %s1511_s13 = smov 0   ;;  %s1513_s14 = smov 0  }
   0x9 LB: > { %s1532_s15 = sadd.s32 4294967295, %s1443_s14   ;;  %p164_p0 = scmp.ne.s32.totalorder %s1431_s11, %s1427_s10  ;;  %s1443_s14 = sphi %s1513_s14, %s22_s14   ;;  %s1439_s13 = sphi %s1511_s13, %s1829_s13   ;;  %s1435_s12 = sphi %s1509_s12, %s1828_s12   ;;  %s1431_s11 = sphi %s1507_s11, %s1827_s11   ;;  %s1427_s10 = sphi %s1505_s10, %s1826_s10   ;;  %s1423_s30 = sphi %s1503_s30, %s1825_s30  }
   0xa   : > { %p165_p1 = scmp.eq.s32.totalorder %s1443_s14, 0  ;;  %p170_p2 = scmp.ne.s32.totalorder %s1427_s10, %s1423_s30 }
   0xb   : > { %p1796_p3 = scmp.eq.s32.totalorder %s1532_s15, 0  ;;  %p954_p4 = scmp.ge.s32.totalorder %s1443_s14, 1 }
   0xc   : > { %p166_p5 = por %p165_p1, %p164_p0  ;;  %p303_p6 = scmp.lt.s32.totalorder %s1443_s14, 4 }
   0xd   : > { %p1543_p7 = por %p1796_p3, %p170_p2  ;;  %s1445_s18 = smov [#allocation3]  }
   0xe   : > { %p1547_p8 = pnand %p954_p4, %p303_p6  ;;  %s318_s19 = sshll.u32 %s1445_s18, 4  ;;  %s319_s19 = int_to_ptr.vmem [resolvable:$true] %s318_s19 }
   0xf   : > { %s1806_s16 = scalar_select %p1543_p7, 1, 0 }
  0x10   : > { %s1807_s17 = scalar_select %p1547_p8, 1, 0 }
  0x11   : > { %p1188_p9 = pneg %p1547_p8  ;;  %p1201_p11 = scmp.lt.s32.totalorder %s1443_s14, 3 }
  0x12   : > { %s1269_s24 = scalar_lea.hbm %s1786_s0, 256 }
  0x13   : > { %p1555_p10 = pnand %p1188_p9, %p1796_p3  ;;  %p1560_p12 = pnand %p1201_p11, %p166_p5 }
  0x14   : > { %p1270_p13 = scmp.ne.s32.totalorder %s1786_s0, %s1269_s24  ;;  %p1276_p4 = scmp.lt.u32.totalorder %s1269_s24, %s1786_s0 }
  0x15   : > { %s1809_s21 = scalar_select %p1560_p12, 1, 0 }
  0x16   : > { %p1271_p0 = pneg %p1555_p10 }
  0x18   : > { %p1272_p1 = pnand %p1271_p0, %p1270_p13 }
  0x1a   : > { %p1273_p2 = pneg %p1272_p1 }
  0x1c   : > { %p1278_p5 = pnand %p1276_p4, %p1273_p2 }
  0x1e   : > { %1281 = shalt.err (!%p1278_p5)
}
  0x1f   : > { %s1282_s29 = scalar_lea.vmem %s319_s19, 256  ;;  %p1290_p3 = scmp.lt.s32.totalorder %s319_s19, %s319_s19 }
  0x20   : > { %p1283_p6 = scmp.ne.s32.totalorder %s319_s19, %s1282_s29  ;;  %p1291_p7 = scmp.lt.s32.totalorder %s1282_s29, %s1282_s29 }
  0x22   : > { %p1285_p9 = pnand %p1283_p6, %p1271_p0  ;;  %p1292_p8 = por %p1291_p7, %p1290_p3 }
  0x24   : > { %p1286_p11 = pneg %p1285_p9 }
  0x26   : > { %p1293_p12 = pnand %p1292_p8, %p1286_p11 }
  0x28   : > { %1296 = shalt.err (!%p1293_p12)
}
  0x29   : > { %s1801_s30 = smov 128   ;;  %s1802_s18 = smov 8  }
  0x2a   : > { %1191 = dma.hbm_to_vmem [thread:$0]  (!%p1555_p10), %s1786_s0, 256, %s319_s19, [#allocation4], %s1801_s30, %s1801_s30, %s1802_s18  }
  0x2b   : > { %s1448_s24 = smov [#allocation6]   ;;  %s1297_s28 = scalar_lea.hbm %s1787_s1, 2048 }
  0x2c   : > { %s331_s25 = sshll.u32 %s1448_s24, 4  ;;  %p1298_p3 = scmp.ne.s32.totalorder %s1787_s1, %s1297_s28  ;;  %s332_s25 = int_to_ptr.vmem [resolvable:$true] %s331_s25 }
  0x2d   : > { %p1304_p12 = scmp.lt.u32.totalorder %s1297_s28, %s1787_s1 }
  0x2e   : > { %p1300_p7 = pnand %p1298_p3, %p1271_p0 }
  0x30   : > { %p1301_p8 = pneg %p1300_p7 }
  0x32   : > { %p1306_p13 = pnand %p1304_p12, %p1301_p8 }
  0x34   : > { %1309 = shalt.err (!%p1306_p13)
}
  0x35   : > { %s1310_s19 = scalar_lea.vmem %s332_s25, 2048  ;;  %p1318_p5 = scmp.lt.s32.totalorder %s332_s25, %s332_s25 }
  0x36   : > { %p1311_p1 = scmp.ne.s32.totalorder %s332_s25, %s1310_s19  ;;  %p1319_p6 = scmp.lt.s32.totalorder %s1310_s19, %s1310_s19 }
  0x38   : > { %p1313_p2 = pnand %p1311_p1, %p1271_p0  ;;  %p1320_p9 = por %p1319_p6, %p1318_p5 }
  0x3a   : > { %p1314_p4 = pneg %p1313_p2 }
  0x3c   : > { %p1321_p11 = pnand %p1320_p9, %p1314_p4 }
  0x3e   : > { %1324 = shalt.err (!%p1321_p11)
}
  0x3f   : > { %1194 = dma.hbm_to_vmem [thread:$0]  (!%p1555_p10), %s1787_s1, 2048, %s332_s25, [#allocation7], %s1801_s30, %s1801_s30, %s1802_s18  }
  0x40   : > { %s31_s9 = sadd.s32 1, %s1439_s13  ;;  %s946_s22 = sadd.s32 4294967295, %s1439_s13 }
  0x41   : > { %p32_p0 = scmp.ge.s32.totalorder %s31_s9, 3  ;;  %p149_p3 = scmp.gt.s32.totalorder %s946_s22, 0 }
  0x42   : > { %s354_s24 = sand.u32 1, %s1443_s14   ;;  %s356_s26 = sand.u32 1, %s1431_s11  }
  0x43   : > { %s1831_s9 = smov (%p32_p0, %s31_s9), 0  ;;  %s1833_s22 = smov (!%p149_p3, %s946_s22), 0 }
  0x44   : > { %s947_s20 = sadd.s32 4294967295, %s1831_s9  ;;  %s958_s27 = sshll.u32 %s356_s26, 7 }
  0x45   : > { %p152_p7 = scmp.gt.s32.totalorder %s947_s20, 0  ;;  %s997_s28 = sshll.u32 %s1833_s22, 11 }
  0x46   : > { %s1623_s19 = scalar_lea.hbm %s1791_s5, %s997_s28  ;;  %s358_s4 = scalar_lea.vmem [#allocation8], %s958_s27 }
  0x47   : > { %s1835_s20 = smov (!%p152_p7, %s947_s20), 0  ;;  %s368_s23 = sshll.u32 %s358_s4, 4  ;;  %s1629_s23 = int_to_ptr.vmem [resolvable:$true] %s368_s23 }
  0x48   : > { %s154_s3 = ssub.s32 %s1833_s22, %s1835_s20  ;;  %s1631_s26 = scalar_lea.sflag [#allocation4], %s354_s24 }
  0x49   : > { %p1625_p10 = scmp.eq.s32.totalorder %s154_s3, 0  ;;  %s1325_s18 = scalar_lea.hbm %s1623_s19, 2048 }
  0x4a   : > { %p1326_p8 = scmp.ne.s32.totalorder %s1623_s19, %s1325_s18  ;;  %p1811_p12 = scmp.ne.s32.totalorder %s1809_s21, 0 }
  0x4b   : > { %s1330_s20 = scalar_lea.hbm %s1791_s5, 4096  ;;  %p1331_p4 = scmp.lt.u32.totalorder %s1623_s19, %s1791_s5 }
  0x4c   : > { %p1327_p13 = pneg %p1811_p12  ;;  %p1332_p5 = scmp.lt.u32.totalorder %s1330_s20, %s1325_s18 }
  0x4d   : > { %p1334_p9 = scmp.lt.u32.totalorder %s1325_s18, %s1623_s19 }
  0x4e   : > { %p1328_p1 = pnand %p1327_p13, %p1326_p8  ;;  %p1333_p6 = por %p1332_p5, %p1331_p4 }
  0x50   : > { %p1329_p2 = pneg %p1328_p1  ;;  %p1335_p11 = por %p1334_p9, %p1333_p6 }
  0x52   : > { %p1336_p0 = pnand %p1335_p11, %p1329_p2 }
  0x54   : > { %1339 = shalt.err (!%p1336_p0)
}
  0x55   : > { %s1340_s24 = scalar_lea.vmem %s1629_s23, 2048  ;;  %s1449_s25 = smov [#allocation8]  }
  0x56   : > { %p1341_p3 = scmp.ne.s32.totalorder %s1629_s23, %s1340_s24  ;;  %s1345_s3 = sshll.u32 %s1449_s25, 4  ;;  %s1346_s3 = int_to_ptr.vmem [resolvable:$false] %s1345_s3 }
  0x57   : > { %s1347_s4 = scalar_lea.vmem %s1346_s3, 4096  ;;  %p1348_p1 = scmp.lt.s32.totalorder %s1629_s23, %s1346_s3 }
  0x58   : > { %p1343_p7 = pnand %p1341_p3, %p1327_p13  ;;  %p1349_p4 = scmp.lt.s32.totalorder %s1347_s4, %s1340_s24 }
  0x5a   : > { %p1344_p8 = pneg %p1343_p7  ;;  %p1350_p5 = por %p1349_p4, %p1348_p1 }
  0x5c   : > { %p1351_p6 = pnand %p1350_p5, %p1344_p8 }
  0x5e   : > { %1354 = shalt.err (!%p1351_p6)
}
  0x5f   : > { %s1812_s18 = smov 8   ;;  %s1813_s28 = smov 128  }
  0x60   : > { %1198 = dma.hbm_to_vmem [thread:$0]  (!%p1811_p12), %s1623_s19, 2048, %s1629_s23, %s1631_s26, %s1813_s28, %s1813_s28, %s1812_s18  }
  0x61   : > { %s1814_s22 = sadd.s32 1, %s1431_s11  ;;  %p1815_p13 = scmp.ne.s32.totalorder %s1807_s17, 0 }
  0x62   : > { %s1667_s20 = scalar_select %p1625_p10, %s1431_s11, %s1814_s22  }
  0x63   : > { %416 = sbr.rel (%p1815_p13) target bundleno = 1296 (0x510), region = 56  ;;  %p1816_p2 = scmp.eq.s32.totalorder (!%p1815_p13), %s1532_s15, 0 }
  0x6a   : > { %1406 = dma.done.wait (%p1816_p2), [#allocation4], 256   ;;  %p1817_p9 = pmov %p1816_p2 }
  0x6b   : > { %p1818_p11 = pmov %p1816_p2 }
  0x6c   : > { %1408 = vsyncadd (%p1817_p9), [#allocation4], 4294967040 }
  0x6d   : > { %1410 = dma.done.wait (%p1818_p11), [#allocation7], 2048   ;;  %p1819_p0 = pmov %p1816_p2 }
  0x6e   : > { %s426_s21 = sand.u32 1, %s1532_s15   ;;  %s428_s30 = sand.u32 1, %s1427_s10  }
  0x6f   : > { %1412 = vsyncadd (%p1819_p0), [#allocation7], 4294965248  ;;  %s965_s23 = sshll.u32 %s428_s30, 7  ;;  %s427_s17 = scalar_lea.sflag [#allocation4], %s426_s21 }
  0x70   : > { %s1681_s19 = scalar_lea.vmem [#allocation8], %s965_s23  ;;  %p1820_p10 = scmp.ne.s32.totalorder %s1806_s16, 0 }
  0x72   : > { %1414 = dma.done.wait (%p1820_p10), %s427_s17, 2048  }
  0x73   : > { %1416 = vsyncadd (%p1820_p10), %s427_s17, 4294965248  ;;  %s966_s26 = sadd.s32 4294967295, %s1435_s12  ;;  %p984_p7 = scmp.ne.s32.totalorder %s1435_s12, 0 }
  0x74   : > { %p483_p12 = scmp.gt.s32.totalorder %s966_s26, 0  ;;  %p967_p3 = scmp.lt.s32.totalorder %s966_s26, 1  ;;  %v516_v0 = vld [vmem:[#allocation6] sm:$0xff] (!%p984_p7)  ;;  %v517_v1 = vld [vmem:[#allocation6 + $0x8] sm:$0xff] (!%p984_p7)  ;;  %v518_v2 = vld [vmem:[#allocation6 + $0x10] sm:$0xff] (!%p984_p7)  ;;  %v626_v33 = vlaneseq (!%p984_p7) }
  0x75   : > { %513 = sbr.rel (%p984_p7) target bundleno = 685 (0x2ad), region = 72  ;;  %v1110_v3 = vpack.c.bf16 (!%p984_p7), %v517_v1, %v516_v0  ;;  %v519_v4 = vld [vmem:[#allocation6 + $0x18] sm:$0xff] (!%p984_p7)  ;;  %v520_v6 = vld [vmem:[#allocation6 + $0x20] sm:$0xff] (!%p984_p7)  ;;  %v521_v7 = vld [vmem:[#allocation6 + $0x28] sm:$0xff] (!%p984_p7)  ;;  %s1821_s17 = sld [smem:[#allocation14_spill]] (!%p984_p7) }
  0x76   : > { %s1837_s26 = smov (!%p483_p12, %s966_s26), 0  ;;  %v1114_v5 = vpack.c.bf16 (!%p984_p7), %v519_v4, %v518_v2  ;;  %v1118_v8 = vpack.c.bf16 (!%p984_p7), %v521_v7, %v520_v6  ;;  %v514_v9 = vld [vmem:[#allocation3] sm:$0xff] (!%p984_p7)  ;;  %v523_v11 = vld [vmem:[#allocation6 + $0x38] sm:$0xff] (!%p984_p7)  ;;  %v524_v13 = vld [vmem:[#allocation6 + $0x40] sm:$0xff] (!%p984_p7)  ;;  %v627_v34 = vand.u32 (!%p984_p7), 127, %v626_v33  ;;  %s1822_s25 = sld [smem:[#allocation15_spill]] (!%p984_p7) }
  0x77   : > { %s1839_s26 = smov (!%p967_p3, %s1837_s26), 1  ;;  %1111 = vmatprep.subr.bf16.mxu0 (!%p984_p7), %v1110_v3  ;;  %v522_v10 = vld [vmem:[#allocation6 + $0x30] sm:$0xff] (!%p984_p7)  ;;  %1072 = vmatprep.mubr.f32.mxu0 (!%p984_p7), %v514_v9  ;;  %v525_v14 = vld [vmem:[#allocation6 + $0x48] sm:$0xff] (!%p984_p7)  ;;  %v527_v17 = vld [vmem:[#allocation6 + $0x58] sm:$0xff] (!%p984_p7) }
  0x78   : > { %s487_s24 = scalar_lea.vmem %s1792_s6, %s1839_s26  ;;  %s496_s4 = scalar_lea.vmem %s1793_s7, %s1839_s26  ;;  %1113 = vmatpush3.bf16.msra.mxu0 (!%p984_p7), %v1110_v3  ;;  %v1122_v12 = vpack.c.bf16 (!%p984_p7), %v523_v11, %v522_v10  ;;  %v1126_v15 = vpack.c.bf16 (!%p984_p7), %v525_v14, %v524_v13  ;;  %v526_v16 = vld [vmem:[#allocation6 + $0x50] sm:$0xff] (!%p984_p7)  ;;  %v528_v19 = vld [vmem:[#allocation6 + $0x60] sm:$0xff] (!%p984_p7)  ;;  %v529_v20 = vld [vmem:[#allocation6 + $0x68] sm:$0xff] (!%p984_p7)  ;;  %vm628_vm0 = vcmp.lt.s32.totalorder (!%p984_p7), %v627_v34, 32 }
  0x79   : > { %s505_s28 = scalar_lea.vmem %s1794_s8, %s1839_s26  ;;  %1115 = vmatprep.subr.bf16.mxu0 (!%p984_p7), %v1114_v5  ;;  %v1130_v18 = vpack.c.bf16 (!%p984_p7), %v527_v17, %v526_v16  ;;  %v1134_v21 = vpack.c.bf16 (!%p984_p7), %v529_v20, %v528_v19  ;;  %v530_v22 = vld [vmem:[#allocation6 + $0x70] sm:$0xff] (!%p984_p7)  ;;  %v531_v23 = vld [vmem:[#allocation6 + $0x78] sm:$0xff] (!%p984_p7)  ;;  %v985_v26 = vld [vmem:[%s1788_s2] ss:$0 sm:$0xff] (!%p984_p7) }
  0x7a   : > { %v1138_v24 = vpack.c.bf16 (!%p984_p7), %v531_v23, %v530_v22  ;;  %v515_v25 = vld [vmem:[#allocation3 + $0x8] sm:$0xff] (!%p984_p7) }
  0x7b   : > { %v986_v52 = vld [vmem:[%s1821_s17] ss:$0 sm:$0xff] (!%p984_p7) }
  0x7c   : > { %1117 = vmatpush3.bf16.msra.mxu0 %v1114_v5  ;;  %v987_v54 = vld [vmem:[%s1822_s25] ss:$0 sm:$0xff] }
  0x7d   : > { %1119 = vmatprep.subr.bf16.mxu0 %v1118_v8 }
  0x80   : > { %1121 = vmatpush3.bf16.msra.mxu0 %v1118_v8 }
  0x81   : > { %1123 = vmatprep.subr.bf16.mxu0 %v1122_v12 }
  0x84   : > { %1125 = vmatpush3.bf16.msra.mxu0 %v1122_v12 }
  0x85   : > { %1127 = vmatprep.subr.bf16.mxu0 %v1126_v15 }
  0x88   : > { %1129 = vmatpush3.bf16.msra.mxu0 %v1126_v15 }
  0x89   : > { %1131 = vmatprep.subr.bf16.mxu0 %v1130_v18 }
  0x8c   : > { %1133 = vmatpush3.bf16.msra.mxu0 %v1130_v18 }
  0x8d   : > { %1135 = vmatprep.subr.bf16.mxu0 %v1134_v21 }
  0x90   : > { %1137 = vmatpush3.bf16.msra.mxu0 %v1134_v21 }
  0x91   : > { %1139 = vmatprep.subr.bf16.mxu0 %v1138_v24 }
  0x94   : > { %1141 = vmatpush3.bf16.msra.mxu0 %v1138_v24 }
  0x97   : > { %1073 = vmatmul.mubr.f32.vlgmr.msra.gmra.mrb[0].mxu0 %v515_v25 }
 0x16a   : > { %v1074_v27 = vpop.f32.mrb[0].mxu0 }
 0x16b   : > { %v607_v28 = vpop.f32.mrb[1].mxu0  ;;  %v613_v30 = vadd.f32 %v1074_v27, %v985_v26 }
 0x16c   : > { %v608_v29 = vadd.f32 %v985_v26, %v607_v28 }
 0x16d   : > { %v617_v32 = vmax.f32 %v613_v30, 0.0 }
 0x16e   : > { %v616_v31 = vmax.f32 %v608_v29, 0.0 }
 0x170   : > { %618 = vadd.xlane.f32.xlu0 %v616_v31 }
 0x174   : > { %620 = vadd.xlane.f32.xlu0 %v617_v32 }
 0x1fd   : > { %v619_v35 = vpop.xlane.xlu0 %618 }
 0x1fe   : > { %v622_v36 = vmul.f32 0.03125, %v619_v35 }
 0x200   : > { %v624_v37 = vsub.f32 %v616_v31, %v622_v36 }
 0x201   : > { %v621_v38 = vpop.xlane.xlu0 %620 }
 0x202   : > { %v623_v39 = vmul.f32 0.03125, %v621_v38  ;;  %v629_v40 = vsel %vm628_vm0, %v624_v37, 0.0 }
 0x203   : > { %v631_v41 = vmul.f32 %v629_v40, %v629_v40 }
 0x204   : > { %v625_v42 = vsub.f32 %v617_v32, %v623_v39 }
 0x205   : > { %633 = vadd.xlane.f32.xlu1 %v631_v41 }
 0x206   : > { %v630_v43 = vsel %vm628_vm0, %v625_v42, 0.0 }
 0x207   : > { %v632_v44 = vmul.f32 %v630_v43, %v630_v43 }
 0x209   : > { %635 = vadd.xlane.f32.xlu1 %v632_v44 }
 0x292   : > { %v634_v45 = vpop.xlane.xlu1 %633 }
 0x293   : > { %v637_v46 = vmul.f32 0.03125, %v634_v45 }
 0x295   : > { %v639_v47 = vadd.f32 1e-05, %v637_v46 }
 0x296   : > { %v636_v48 = vpop.xlane.xlu1 %635 }
 0x297   : > { %1261 = vrsqrt.f32 %v639_v47  ;;  %v638_v49 = vmul.f32 0.03125, %v636_v48 }
 0x299   : > { %v640_v50 = vadd.f32 1e-05, %v638_v49 }
 0x29b   : > { %1263 = vrsqrt.f32 %v640_v50 }
 0x2a1   : > { %v1262_v51 = vpop.eup %1261 }
 0x2a2   : > { %v643_v53 = vmul.f32 %v1262_v51, %v629_v40 }
 0x2a4   : > { %v651_v55 = vmul.f32 %v986_v52, %v643_v53 }
 0x2a5   : > { %v1264_v56 = vpop.eup %1263 }
 0x2a6   : > { %v659_v57 = vadd.f32 %v987_v54, %v651_v55  ;;  %v644_v58 = vmul.f32 %v1264_v56, %v630_v43 }
 0x2a8   : > { %661 = vst [vmem:[#allocation2] sm:$0xff] %v659_v57  ;;  %v652_v59 = vmul.f32 %v986_v52, %v644_v58 }
 0x2aa   : > { %v660_v60 = vadd.f32 %v987_v54, %v652_v59 }
 0x2ac   : > { %662 = vst [vmem:[#allocation2 + $0x8] sm:$0xff] %v660_v60 }
 0x2ad PF: > { %p988_p8 = scmp.le.s32.totalorder %s1435_s12, 0 }
 0x2ae   : > { %v669_v61 = vld [vmem:[%s1681_s19] sm:$0xff] (!%p988_p8)  ;;  %v670_v62 = vld [vmem:[%s1681_s19 + $0x8] sm:$0xff] (!%p988_p8)  ;;  %v671_v63 = vld [vmem:[%s1681_s19 + $0x10] sm:$0xff] (!%p988_p8)  ;;  %v779_v30 = vlaneseq (!%p988_p8) }
 0x2af   : > { %666 = sbr.rel (%p988_p8) target bundleno = 1255 (0x4e7), region = 76  ;;  %v1142_v0 = vpack.c.bf16 (!%p988_p8), %v670_v62, %v669_v61  ;;  %v672_v1 = vld [vmem:[%s1681_s19 + $0x18] sm:$0xff] (!%p988_p8)  ;;  %v673_v3 = vld [vmem:[%s1681_s19 + $0x20] sm:$0xff] (!%p988_p8)  ;;  %v674_v4 = vld [vmem:[%s1681_s19 + $0x28] sm:$0xff] (!%p988_p8) }
 0x2b0   : > { %v1146_v2 = vpack.c.bf16 (!%p988_p8), %v672_v1, %v671_v63  ;;  %v1150_v5 = vpack.c.bf16 (!%p988_p8), %v674_v4, %v673_v3  ;;  %v667_v6 = vld [vmem:[#allocation2] sm:$0xff] (!%p988_p8)  ;;  %v675_v7 = vld [vmem:[%s1681_s19 + $0x30] sm:$0xff] (!%p988_p8)  ;;  %v676_v8 = vld [vmem:[%s1681_s19 + $0x38] sm:$0xff] (!%p988_p8)  ;;  %v780_v31 = vand.u32 (!%p988_p8), 127, %v779_v30 }
 0x2b1   : > { %1143 = vmatprep.subr.bf16.mxu0 (!%p988_p8), %v1142_v0  ;;  %1107 = vmatprep.mubr.f32.mxu0 (!%p988_p8), %v667_v6  ;;  %v1154_v9 = vpack.c.bf16 (!%p988_p8), %v676_v8, %v675_v7  ;;  %v677_v10 = vld [vmem:[%s1681_s19 + $0x40] sm:$0xff] (!%p988_p8)  ;;  %v678_v11 = vld [vmem:[%s1681_s19 + $0x48] sm:$0xff] (!%p988_p8)  ;;  %v679_v13 = vld [vmem:[%s1681_s19 + $0x50] sm:$0xff] (!%p988_p8) }
 0x2b2   : > { %1145 = vmatpush3.bf16.msra.mxu0 (!%p988_p8), %v1142_v0  ;;  %v1158_v12 = vpack.c.bf16 (!%p988_p8), %v678_v11, %v677_v10  ;;  %v680_v14 = vld [vmem:[%s1681_s19 + $0x58] sm:$0xff] (!%p988_p8)  ;;  %v681_v16 = vld [vmem:[%s1681_s19 + $0x60] sm:$0xff] (!%p988_p8)  ;;  %v682_v17 = vld [vmem:[%s1681_s19 + $0x68] sm:$0xff] (!%p988_p8)  ;;  %vm781_vm1 = vcmp.lt.s32.totalorder (!%p988_p8), %v780_v31, 32 }
 0x2b3   : > { %1147 = vmatprep.subr.bf16.mxu0 (!%p988_p8), %v1146_v2  ;;  %v1162_v15 = vpack.c.bf16 (!%p988_p8), %v680_v14, %v679_v13  ;;  %v1166_v18 = vpack.c.bf16 (!%p988_p8), %v682_v17, %v681_v16  ;;  %v683_v19 = vld [vmem:[%s1681_s19 + $0x70] sm:$0xff] (!%p988_p8)  ;;  %v684_v20 = vld [vmem:[%s1681_s19 + $0x78] sm:$0xff] (!%p988_p8)  ;;  %v668_v22 = vld [vmem:[#allocation2 + $0x8] sm:$0xff] (!%p988_p8) }
 0x2b4   : > { %v1170_v21 = vpack.c.bf16 (!%p988_p8), %v684_v20, %v683_v19  ;;  %v989_v23 = vld [vmem:[%s487_s24] ss:$0 sm:$0xff] (!%p988_p8) }
 0x2b5   : > { %v990_v49 = vld [vmem:[%s496_s4] ss:$0 sm:$0xff] (!%p988_p8) }
 0x2b6   : > { %1149 = vmatpush3.bf16.msra.mxu0 %v1146_v2  ;;  %v991_v51 = vld [vmem:[%s505_s28] ss:$0 sm:$0xff] }
 0x2b7   : > { %1151 = vmatprep.subr.bf16.mxu0 %v1150_v5 }
 0x2ba   : > { %1153 = vmatpush3.bf16.msra.mxu0 %v1150_v5 }
 0x2bb   : > { %1155 = vmatprep.subr.bf16.mxu0 %v1154_v9 }
 0x2be   : > { %1157 = vmatpush3.bf16.msra.mxu0 %v1154_v9 }
 0x2bf   : > { %1159 = vmatprep.subr.bf16.mxu0 %v1158_v12 }
 0x2c2   : > { %1161 = vmatpush3.bf16.msra.mxu0 %v1158_v12 }
 0x2c3   : > { %1163 = vmatprep.subr.bf16.mxu0 %v1162_v15 }
 0x2c6   : > { %1165 = vmatpush3.bf16.msra.mxu0 %v1162_v15 }
 0x2c7   : > { %1167 = vmatprep.subr.bf16.mxu0 %v1166_v18 }
 0x2ca   : > { %1169 = vmatpush3.bf16.msra.mxu0 %v1166_v18 }
 0x2cb   : > { %1171 = vmatprep.subr.bf16.mxu0 %v1170_v21 }
 0x2ce   : > { %1173 = vmatpush3.bf16.msra.mxu0 %v1170_v21 }
 0x2d1   : > { %1108 = vmatmul.mubr.f32.vlgmr.msra.gmra.mrb[0].mxu0 %v668_v22 }
 0x3a4   : > { %v1109_v24 = vpop.f32.mrb[0].mxu0 }
 0x3a5   : > { %v760_v25 = vpop.f32.mrb[1].mxu0  ;;  %v766_v27 = vadd.f32 %v1109_v24, %v989_v23 }
 0x3a6   : > { %v761_v26 = vadd.f32 %v989_v23, %v760_v25 }
 0x3a7   : > { %v770_v29 = vmax.f32 %v766_v27, 0.0 }
 0x3a8   : > { %v769_v28 = vmax.f32 %v761_v26, 0.0 }
 0x3aa   : > { %771 = vadd.xlane.f32.xlu0 %v769_v28 }
 0x3ae   : > { %773 = vadd.xlane.f32.xlu0 %v770_v29 }
 0x437   : > { %v772_v32 = vpop.xlane.xlu0 %771 }
 0x438   : > { %v775_v33 = vmul.f32 0.03125, %v772_v32 }
 0x43a   : > { %v777_v34 = vsub.f32 %v769_v28, %v775_v33 }
 0x43b   : > { %v774_v35 = vpop.xlane.xlu0 %773 }
 0x43c   : > { %v776_v36 = vmul.f32 0.03125, %v774_v35  ;;  %v782_v37 = vsel %vm781_vm1, %v777_v34, 0.0 }
 0x43d   : > { %v784_v38 = vmul.f32 %v782_v37, %v782_v37 }
 0x43e   : > { %v778_v39 = vsub.f32 %v770_v29, %v776_v36 }
 0x43f   : > { %786 = vadd.xlane.f32.xlu1 %v784_v38 }
 0x440   : > { %v783_v40 = vsel %vm781_vm1, %v778_v39, 0.0 }
 0x441   : > { %v785_v41 = vmul.f32 %v783_v40, %v783_v40 }
 0x443   : > { %788 = vadd.xlane.f32.xlu1 %v785_v41 }
 0x4cc   : > { %v787_v42 = vpop.xlane.xlu1 %786 }
 0x4cd   : > { %v790_v43 = vmul.f32 0.03125, %v787_v42 }
 0x4cf   : > { %v792_v44 = vadd.f32 1e-05, %v790_v43 }
 0x4d0   : > { %v789_v45 = vpop.xlane.xlu1 %788 }
 0x4d1   : > { %1265 = vrsqrt.f32 %v792_v44  ;;  %v791_v46 = vmul.f32 0.03125, %v789_v45 }
 0x4d3   : > { %v793_v47 = vadd.f32 1e-05, %v791_v46 }
 0x4d5   : > { %1267 = vrsqrt.f32 %v793_v47 }
 0x4db   : > { %v1266_v48 = vpop.eup %1265 }
 0x4dc   : > { %v796_v50 = vmul.f32 %v1266_v48, %v782_v37 }
 0x4de   : > { %v804_v52 = vmul.f32 %v990_v49, %v796_v50 }
 0x4df   : > { %v1268_v53 = vpop.eup %1267 }
 0x4e0   : > { %v812_v54 = vadd.f32 %v991_v51, %v804_v52  ;;  %v797_v55 = vmul.f32 %v1268_v53, %v783_v40 }
 0x4e2   : > { %814 = vst [vmem:[#allocation2] sm:$0xff] %v812_v54  ;;  %v805_v56 = vmul.f32 %v990_v49, %v797_v55 }
 0x4e4   : > { %v813_v57 = vadd.f32 %v991_v51, %v805_v56 }
 0x4e6   : > { %815 = vst [vmem:[#allocation2 + $0x8] sm:$0xff] %v813_v57 }
 0x4e7 PF: > { %p992_p1 = scmp.ne.s32.totalorder %s1435_s12, 2 }
 0x4e9   : > { %819 = sbr.rel (%p992_p1) target bundleno = 1264 (0x4f0), region = 80  ;;  %v820_v58 = vld [vmem:[#allocation2] sm:$0xff] (!%p992_p1) }
 0x4ea   : > { %822 = vst [vmem:[#allocation9] sm:$0xff] (!%p992_p1), %v820_v58 }
 0x4ed   : > { %v821_v59 = vld [vmem:[#allocation2 + $0x8] sm:$0xff] (!%p992_p1) }
 0x4ee   : > { %823 = vst [vmem:[#allocation9 + $0x8] sm:$0xff] (!%p992_p1), %v821_v59 }
 0x4f0 PF: > { %p1204_p4 = scmp.eq.s32.totalorder %s1532_s15, 2  ;;  %s1450_s26 = smov [#allocation9]  }
 0x4f1   : > { %s833_s4 = sshll.u32 %s1450_s26, 4  ;;  %s834_s4 = int_to_ptr.vmem [resolvable:$true] %s833_s4 }
 0x4f2   : > { %s1355_s28 = scalar_lea.vmem %s834_s4, 256  ;;  %p1362_p2 = scmp.lt.s32.totalorder %s834_s4, %s834_s4 }
 0x4f3   : > { %p1356_p5 = scmp.ne.s32.totalorder %s834_s4, %s1355_s28  ;;  %p1363_p9 = scmp.lt.s32.totalorder %s1355_s28, %s1355_s28 }
 0x4f5   : > { %p1357_p6 = pnand %p1356_p5, %p1204_p4  ;;  %p1364_p11 = por %p1363_p9, %p1362_p2 }
 0x4f7   : > { %p1358_p13 = pneg %p1357_p6 }
 0x4f9   : > { %p1365_p0 = pnand %p1364_p11, %p1358_p13 }
 0x4fb   : > { %1368 = shalt.err (!%p1365_p0)
}
 0x4fc   : > { %s1823_s30 = sld [smem:[#allocation16_spill]] }
 0x502   : > { %s1824_s23 = smov %s1823_s30  ;;  %s1369_s17 = scalar_lea.hbm %s1823_s30, 256 }
 0x503   : > { %p1370_p10 = scmp.ne.s32.totalorder %s1824_s23, %s1369_s17  ;;  %p1375_p7 = scmp.lt.u32.totalorder %s1369_s17, %s1824_s23 }
 0x505   : > { %p1371_p12 = pnand %p1370_p10, %p1204_p4 }
 0x507   : > { %p1372_p3 = pneg %p1371_p12 }
 0x509   : > { %p1377_p8 = pnand %p1375_p7, %p1372_p3 }
 0x50b   : > { %1380 = shalt.err (!%p1377_p8)
}
 0x50c   : > { %s1451_s16 = smov 128   ;;  %s1452_s19 = smov 8  }
 0x50d   : > { %1185 = dma.vmem_to_hbm [thread:$0]  (%p1204_p4), %s834_s4, 256, %s1824_s23, [#allocation5], %s1451_s16, %s1451_s16, %s1452_s19  }
 0x50e   : > { %1418 = dma.done.wait (%p1204_p4), [#allocation5], 256  }
 0x50f   : > { %1420 = vsyncadd (%p1204_p4), [#allocation5], 4294967040 }
 0x510 PF: > { %s22_s14 = sadd.s32 1, %s1443_s14   ;;  %s1825_s30 = smov %s1427_s10 }
 0x511   : > { %p19_p1 = scmp.ge.s32.totalorder %s22_s14, 5   ;;  %s1826_s10 = smov %s1431_s11 }
 0x512   : > { %s1827_s11 = smov %s1667_s20  ;;  %s1828_s12 = smov %s1439_s13 }
 0x513   : > { %s1829_s13 = smov %s1831_s9  ;;  %21 = sbr.rel (!%p19_p1) target bundleno = 9 (0x9), region = 123 }
 0x51a   :  { %849 = vsyncpa [#allocation4], 1 }
 0x51b   :  { %851 = vsyncpa [#allocation4 + $0x1], 1 }
 0x51c   :  { %852 = vsyncpa [#allocation7], 1 }
 0x51d   :  { %853 = vsyncpa [#allocation5], 1 }
 0x51e   :  { %855 = vsyncpa [#allocation5 + $0x1], 1 }

</bundles_post_ra>
